<compile_context>
chip_gen: v7x
topology: tpu7x:2x2x1
jax: 0.10.0
libtpu: 0.0.40
codegen_flags: <defaults>
</compile_context>

<pallas_src>
import functools

import jax
import jax.numpy as jnp
from jax.experimental import pallas as pl
from jax.experimental.pallas import tpu as pltpu


def _round_up(x, m):
    return ((x + m - 1) // m) * m


def _make_kernel(num_actions, compute_dtype):
    """Kernel closure over static real action count and activation dtype."""

    def kernel(x_ref, act_ref, w1_ref, b1_ref, w2_ref, b2_ref, w3_ref, b3_ref,
               logits_ref, logp_ref):
        # ---- MLP hot path: 3 MXU matmuls (f32 accumulation) + tanh ----
        x = x_ref[...]                                               # (tb, D)
        h1 = jnp.tanh(
            (jnp.dot(x, w1_ref[...], preferred_element_type=jnp.float32)
             + b1_ref[...]).astype(compute_dtype))
        h1 = h1.astype(w2_ref.dtype)
        h2 = jnp.tanh(
            (jnp.dot(h1, w2_ref[...], preferred_element_type=jnp.float32)
             + b2_ref[...]).astype(compute_dtype))
        h2 = h2.astype(w3_ref.dtype)
        # (tb, A_pad) f32; padded columns are exactly 0 (zero-padded w3/b3).
        logits = (jnp.dot(h2, w3_ref[...], preferred_element_type=jnp.float32)
                  + b3_ref[...])

        # Store only the real action columns (masked 8-lane vst, tiny vs. the
        # saved HBM writeback of the 128-wide padded tensor).
        logits_ref[...] = logits[:, :num_actions].astype(logits_ref.dtype)

        # ---- Categorical.log_prob(act): stable log-softmax, real cols only ----
        col = jax.lax.broadcasted_iota(jnp.int32, logits.shape, 1)  # (tb, A_pad)
        valid = col < num_actions
        masked = jnp.where(valid, logits, -1e30)                    # literal, no capture
        m = jnp.max(masked, axis=-1, keepdims=True)                 # (tb, 1)
        lse = m + jnp.log(jnp.sum(jnp.exp(masked - m), axis=-1, keepdims=True))

        # Gather logits[i, act[i]] without materializing full log_probs.
        # NOTE: out-of-range actions (act < 0 or >= num_actions) silently give
        # picked = 0; clamp upstream if that can happen.
        act_col = act_ref[...]                                       # (tb, 1) int32
        picked = jnp.sum(jnp.where(col == act_col, logits, 0.0),
                         axis=-1, keepdims=True)                     # (tb, 1)

        logp_ref[...] = picked - lse                                 # (tb, 1)

    return kernel


@functools.partial(jax.jit, static_argnames=("use_bf16", "tb_max"))
def ppo_actor_forward(x, act, params, *, use_bf16=False, tb_max=4096):
    """Returns (logits, logp_a); `logits` parameterize Categorical(pi)."""
    w1, b1, w2, b2, w3, b3 = params
    B, D = x.shape
    H1 = w1.shape[1]
    H2 = w2.shape[1]
    A = w3.shape[1]
    A_pad = _round_up(A, 128)

    # ---- batch tiling: no batch padding; Pallas clips the tail block ----
    if B <= 512:
        TB = B                                   # single block == full batch dim
    else:
        n_tiles = max(2, pl.cdiv(B, tb_max))
        if n_tiles % 2:
            n_tiles += 1                         # even grid -> even v7x TC split
        TB = _round_up(pl.cdiv(B, n_tiles), 8)
    grid = (pl.cdiv(B, TB),)

    # act as a column (no lane<->sublane relayout in the kernel).
    act_col = act.astype(jnp.int32).reshape(B, 1)

    # Pad only the tiny final-layer weight/bias to a lane-dense 128 columns.
    w3p = jnp.pad(w3, ((0, 0), (0, A_pad - A)))
    b3p = jnp.pad(b3, ((0, 0), (0, A_pad - A)))

    if use_bf16:
        # TODO(synk): for best perf pass x already in bf16 from the producer
        # (avoids an extra HBM pass at the call boundary); keep f32 tanh on v5e.
        xk = x if x.dtype == jnp.bfloat16 else x.astype(jnp.bfloat16)
        w1c, w2c, w3c = (w1.astype(jnp.bfloat16), w2.astype(jnp.bfloat16),
                         w3p.astype(jnp.bfloat16))
        compute_dtype = jnp.bfloat16
    else:
        xk, w1c, w2c, w3c = x, w1, w2, w3p
        compute_dtype = jnp.float32
    # biases stay f32: added after f32 accumulation; log-softmax stays f32.

    kernel = _make_kernel(A, compute_dtype)

    cost = pl.CostEstimate(
        flops=2 * B * (D * H1 + H1 * H2 + H2 * A_pad),
        transcendentals=B * (H1 + H2 + A_pad),
        bytes_accessed=(xk.nbytes + act_col.nbytes
                        + w1c.nbytes + b1.nbytes + w2c.nbytes + b2.nbytes
                        + w3c.nbytes + b3p.nbytes
                        + B * A * 4 + B * 4),
    )

    resident = lambda i: (0, 0)                  # weights/biases stay VMEM-resident

    logits, logp = pl.pallas_call(
        kernel,
        grid=grid,
        in_specs=[
            pl.BlockSpec((TB, D), lambda i: (i, 0)),       # x tile (pipelined DMA)
            pl.BlockSpec((TB, 1), lambda i: (i, 0)),       # act column
            pl.BlockSpec((D, H1), resident),
            pl.BlockSpec((1, H1), resident),
            pl.BlockSpec((H1, H2), resident),
            pl.BlockSpec((1, H2), resident),
            pl.BlockSpec((H2, A_pad), resident),
            pl.BlockSpec((1, A_pad), resident),
        ],
        out_specs=(
            pl.BlockSpec((TB, A), lambda i: (i, 0)),       # real columns only
            pl.BlockSpec((TB, 1), lambda i: (i, 0)),       # logp column
        ),
        out_shape=(
            jax.ShapeDtypeStruct((B, A), jnp.float32),
            jax.ShapeDtypeStruct((B, 1), jnp.float32),
        ),
        compiler_params=pltpu.CompilerParams(
            dimension_semantics=("parallel",)),
        cost_estimate=cost,
    )(xk, act_col, w1c, b1, w2c, b2, w3c, b3p)

    return logits, logp[:, 0]


def init_params(key, input_dim, hidden_sizes, num_actions):
    """Deterministic synthetic init; Linear weights stored as (in, out)."""
    dims = [input_dim] + list(hidden_sizes) + [num_actions]
    params = []
    for i in range(len(dims) - 1):
        key, kw, kb = jax.random.split(key, 3)
        bound = 1.0 / jnp.sqrt(dims[i])
        w = jax.random.uniform(kw, (dims[i], dims[i + 1]), jnp.float32, -bound, bound)
        b = jax.random.uniform(kb, (1, dims[i + 1]), jnp.float32, -bound, bound)
        params += [w, b]
    return tuple(params)


def reference_forward(x, act, params):
    w1, b1, w2, b2, w3, b3 = params
    h1 = jnp.tanh(x @ w1 + b1)
    h2 = jnp.tanh(h1 @ w2 + b2)
    logits = h2 @ w3 + b3
    logp = jax.nn.log_softmax(logits, axis=-1)
    logp_a = jnp.take_along_axis(logp, act.reshape(-1, 1), axis=-1).reshape(-1)
    return logits, logp_a


if __name__ == "__main__":
    # Small shapes consistent with the module: obs dim 32, hidden (32, 32), 8 actions.
    B, D, H1, H2, A = 8, 32, 32, 32, 8

    key = jax.random.PRNGKey(0)
    key, kx, ka = jax.random.split(key, 3)
    x = jax.random.normal(kx, (B, D), jnp.float32)
    act = jax.random.randint(ka, (B,), 0, A, jnp.int32)
    params = init_params(key, D, (H1, H2), A)

    logits, logp_a = ppo_actor_forward(x, act, params)
    jax.block_until_ready((logits, logp_a))

    ref_logits, ref_logp = reference_forward(x, act, params)
    assert logits.shape == (B, A) and logp_a.shape == (B,)
    assert jnp.allclose(logits, ref_logits, atol=1e-5, rtol=1e-5)
    assert jnp.allclose(logp_a, ref_logp, atol=1e-5, rtol=1e-5)

    # Second check: multi-tile gridded path (even grid, clipped tail block).
    B2 = 2500
    key, kx2, ka2 = jax.random.split(key, 3)
    x2 = jax.random.normal(kx2, (B2, D), jnp.float32)
    act2 = jax.random.randint(ka2, (B2,), 0, A, jnp.int32)
    logits2, logp2 = ppo_actor_forward(x2, act2, params)
    jax.block_until_ready((logits2, logp2))
    ref_logits2, ref_logp2 = reference_forward(x2, act2, params)
    assert jnp.allclose(logits2, ref_logits2, atol=1e-4, rtol=1e-4)
    assert jnp.allclose(logp2, ref_logp2, atol=1e-4, rtol=1e-4)

    print("KERNEL_OK")
</pallas_src>

<mosaic_0001>
module attributes {stable_mosaic.version = 11 : i64} {
  func.func @kernel(%arg0: i32, %arg1: memref<8x32xf32, #tpu.memory_space<vmem>>, %arg2: memref<8x1xi32, #tpu.memory_space<vmem>>, %arg3: memref<32x32xf32, #tpu.memory_space<vmem>>, %arg4: memref<1x32xf32, #tpu.memory_space<vmem>>, %arg5: memref<32x32xf32, #tpu.memory_space<vmem>>, %arg6: memref<1x32xf32, #tpu.memory_space<vmem>>, %arg7: memref<32x128xf32, #tpu.memory_space<vmem>>, %arg8: memref<1x128xf32, #tpu.memory_space<vmem>>, %arg9: memref<8x8xf32, #tpu.memory_space<vmem>>, %arg10: memref<8x1xf32, #tpu.memory_space<vmem>>) attributes {dimension_semantics = [#tpu.dimension_semantics<parallel>], iteration_bounds = array<i64: 1>, scalar_prefetch = 0 : i64, scratch_operands = 0 : i64, tpu.core_type = #tpu.core_type<tc>, window_params = [{transform_indices = @transform_0, window_bounds = array<i64: 8, 32>}, {transform_indices = @transform_1, window_bounds = array<i64: 8, 1>}, {pipeline_mode = #tpu.pipeline_mode<synchronous>, transform_indices = @transform_2, window_bounds = array<i64: 32, 32>}, {pipeline_mode = #tpu.pipeline_mode<synchronous>, transform_indices = @transform_3, window_bounds = array<i64: 1, 32>}, {pipeline_mode = #tpu.pipeline_mode<synchronous>, transform_indices = @transform_4, window_bounds = array<i64: 32, 32>}, {pipeline_mode = #tpu.pipeline_mode<synchronous>, transform_indices = @transform_5, window_bounds = array<i64: 1, 32>}, {pipeline_mode = #tpu.pipeline_mode<synchronous>, transform_indices = @transform_6, window_bounds = array<i64: 32, 128>}, {pipeline_mode = #tpu.pipeline_mode<synchronous>, transform_indices = @transform_7, window_bounds = array<i64: 1, 128>}, {transform_indices = @transform_8, window_bounds = array<i64: 8, 8>}, {transform_indices = @transform_9, window_bounds = array<i64: 8, 1>}]} {
    %c0 = arith.constant 0 : index
    %c0_0 = arith.constant 0 : index
    %0 = vector.load %arg1[%c0, %c0_0] : memref<8x32xf32, #tpu.memory_space<vmem>>, vector<8x32xf32>
    %c0_1 = arith.constant 0 : index
    %c0_2 = arith.constant 0 : index
    %1 = vector.load %arg3[%c0_1, %c0_2] : memref<32x32xf32, #tpu.memory_space<vmem>>, vector<32x32xf32>
    %cst = arith.constant dense<0.000000e+00> : vector<8x32xf32>
    %2 = tpu.matmul %0, %1, %cst {dimension_numbers = #tpu.dot_dimension_numbers<[1], [0], [0], [1], [0, 0, 1, 1], [], []>} : vector<8x32xf32>, vector<32x32xf32>, vector<8x32xf32> -> vector<8x32xf32>
    %c0_3 = arith.constant 0 : index
    %c0_4 = arith.constant 0 : index
    %3 = vector.load %arg4[%c0_3, %c0_4] : memref<1x32xf32, #tpu.memory_space<vmem>>, vector<1x32xf32>
    %4 = vector.broadcast %3 : vector<1x32xf32> to vector<8x32xf32>
    %5 = arith.addf %2, %4 : vector<8x32xf32>
    %6 = math.tanh %5 : vector<8x32xf32>
    %c0_5 = arith.constant 0 : index
    %c0_6 = arith.constant 0 : index
    %7 = vector.load %arg5[%c0_5, %c0_6] : memref<32x32xf32, #tpu.memory_space<vmem>>, vector<32x32xf32>
    %cst_7 = arith.constant dense<0.000000e+00> : vector<8x32xf32>
    %8 = tpu.matmul %6, %7, %cst_7 {dimension_numbers = #tpu.dot_dimension_numbers<[1], [0], [0], [1], [0, 0, 1, 1], [], []>} : vector<8x32xf32>, vector<32x32xf32>, vector<8x32xf32> -> vector<8x32xf32>
    %c0_8 = arith.constant 0 : index
    %c0_9 = arith.constant 0 : index
    %9 = vector.load %arg6[%c0_8, %c0_9] : memref<1x32xf32, #tpu.memory_space<vmem>>, vector<1x32xf32>
    %10 = vector.broadcast %9 : vector<1x32xf32> to vector<8x32xf32>
    %11 = arith.addf %8, %10 : vector<8x32xf32>
    %12 = math.tanh %11 : vector<8x32xf32>
    %c0_10 = arith.constant 0 : index
    %c0_11 = arith.constant 0 : index
    %13 = vector.load %arg7[%c0_10, %c0_11] : memref<32x128xf32, #tpu.memory_space<vmem>>, vector<32x128xf32>
    %cst_12 = arith.constant dense<0.000000e+00> : vector<8x128xf32>
    %14 = tpu.matmul %12, %13, %cst_12 {dimension_numbers = #tpu.dot_dimension_numbers<[1], [0], [0], [1], [0, 0, 1, 1], [], []>} : vector<8x32xf32>, vector<32x128xf32>, vector<8x128xf32> -> vector<8x128xf32>
    %c0_13 = arith.constant 0 : index
    %c0_14 = arith.constant 0 : index
    %15 = vector.load %arg8[%c0_13, %c0_14] : memref<1x128xf32, #tpu.memory_space<vmem>>, vector<1x128xf32>
    %16 = vector.broadcast %15 : vector<1x128xf32> to vector<8x128xf32>
    %17 = arith.addf %14, %16 : vector<8x128xf32>
    %18 = vector.extract_strided_slice %17 {offsets = [0, 0], sizes = [8, 8], strides = [1, 1]} : vector<8x128xf32> to vector<8x8xf32>
    %c0_15 = arith.constant 0 : index
    %c0_16 = arith.constant 0 : index
    %19 = vector.load %arg9[%c0_15, %c0_16] : memref<8x8xf32, #tpu.memory_space<vmem>>, vector<8x8xf32>
    tpu.vector_store %arg9[%c0_15, %c0_16], %18 {strides = array<i32>} : memref<8x8xf32, #tpu.memory_space<vmem>>, vector<8x8xf32>,
    %20 = tpu.iota {dimensions = array<i32: 1>} : vector<8x128xi32>
    %c8_i32 = arith.constant 8 : i32
    %21 = vector.broadcast %c8_i32 : i32 to vector<8x128xi32>
    %22 = arith.cmpi slt, %20, %21 : vector<8x128xi32>
    %cst_17 = arith.constant -1.000000e+30 : f32
    %23 = vector.broadcast %cst_17 : f32 to vector<8x128xf32>
    %24 = arith.select %22, %17, %23 : vector<8x128xi1>, vector<8x128xf32>
    %cst_18 = arith.constant dense<0xFF800000> : vector<8xf32>
    %25 = vector.multi_reduction <maximumf>, %24, %cst_18 [1] : vector<8x128xf32> to vector<8xf32>
    %26 = vector.shape_cast %25 : vector<8xf32> to vector<8x1xf32>
    %27 = vector.broadcast %26 : vector<8x1xf32> to vector<8x128xf32>
    %28 = arith.subf %24, %27 : vector<8x128xf32>
    %29 = math.exp %28 : vector<8x128xf32>
    %cst_19 = arith.constant dense<0.000000e+00> : vector<8xf32>
    %30 = vector.multi_reduction <add>, %29, %cst_19 [1] : vector<8x128xf32> to vector<8xf32>
    %31 = vector.shape_cast %30 : vector<8xf32> to vector<8x1xf32>
    %32 = math.log %31 : vector<8x1xf32>
    %33 = arith.addf %26, %32 : vector<8x1xf32>
    %c0_20 = arith.constant 0 : index
    %c0_21 = arith.constant 0 : index
    %34 = vector.load %arg2[%c0_20, %c0_21] : memref<8x1xi32, #tpu.memory_space<vmem>>, vector<8x1xi32>
    %35 = vector.broadcast %34 : vector<8x1xi32> to vector<8x128xi32>
    %36 = arith.cmpi eq, %20, %35 : vector<8x128xi32>
    %cst_22 = arith.constant 0.000000e+00 : f32
    %37 = vector.broadcast %cst_22 : f32 to vector<8x128xf32>
    %38 = arith.select %36, %17, %37 : vector<8x128xi1>, vector<8x128xf32>
    %cst_23 = arith.constant dense<0.000000e+00> : vector<8xf32>
    %39 = vector.multi_reduction <add>, %38, %cst_23 [1] : vector<8x128xf32> to vector<8xf32>
    %40 = vector.shape_cast %39 : vector<8xf32> to vector<8x1xf32>
    %41 = arith.subf %40, %33 : vector<8x1xf32>
    %c0_24 = arith.constant 0 : index
    %c0_25 = arith.constant 0 : index
    %42 = vector.load %arg10[%c0_24, %c0_25] : memref<8x1xf32, #tpu.memory_space<vmem>>, vector<8x1xf32>
    tpu.vector_store %arg10[%c0_24, %c0_25], %41 {strides = array<i32>} : memref<8x1xf32, #tpu.memory_space<vmem>>, vector<8x1xf32>,
    return
  }
  func.func @transform_0(%arg0: i32) -> (i32, i32) {
    %c0_i32 = arith.constant 0 : i32
    %c0_i32_0 = arith.constant 0 : i32
    return %arg0, %c0_i32 : i32, i32
  }
  func.func @transform_1(%arg0: i32) -> (i32, i32) {
    %c0_i32 = arith.constant 0 : i32
    %c0_i32_0 = arith.constant 0 : i32
    return %arg0, %c0_i32 : i32, i32
  }
  func.func @transform_2(%arg0: i32) -> (i32, i32) {
    %c0_i32 = arith.constant 0 : i32
    %c0_i32_0 = arith.constant 0 : i32
    %c0_i32_1 = arith.constant 0 : i32
    return %c0_i32, %c0_i32_0 : i32, i32
  }
  func.func @transform_3(%arg0: i32) -> (i32, i32) {
    %c0_i32 = arith.constant 0 : i32
    %c0_i32_0 = arith.constant 0 : i32
    %c0_i32_1 = arith.constant 0 : i32
    return %c0_i32, %c0_i32_0 : i32, i32
  }
  func.func @transform_4(%arg0: i32) -> (i32, i32) {
    %c0_i32 = arith.constant 0 : i32
    %c0_i32_0 = arith.constant 0 : i32
    %c0_i32_1 = arith.constant 0 : i32
    return %c0_i32, %c0_i32_0 : i32, i32
  }
  func.func @transform_5(%arg0: i32) -> (i32, i32) {
    %c0_i32 = arith.constant 0 : i32
    %c0_i32_0 = arith.constant 0 : i32
    %c0_i32_1 = arith.constant 0 : i32
    return %c0_i32, %c0_i32_0 : i32, i32
  }
  func.func @transform_6(%arg0: i32) -> (i32, i32) {
    %c0_i32 = arith.constant 0 : i32
    %c0_i32_0 = arith.constant 0 : i32
    %c0_i32_1 = arith.constant 0 : i32
    return %c0_i32, %c0_i32_0 : i32, i32
  }
  func.func @transform_7(%arg0: i32) -> (i32, i32) {
    %c0_i32 = arith.constant 0 : i32
    %c0_i32_0 = arith.constant 0 : i32
    %c0_i32_1 = arith.constant 0 : i32
    return %c0_i32, %c0_i32_0 : i32, i32
  }
  func.func @transform_8(%arg0: i32) -> (i32, i32) {
    %c0_i32 = arith.constant 0 : i32
    %c0_i32_0 = arith.constant 0 : i32
    return %arg0, %c0_i32 : i32, i32
  }
  func.func @transform_9(%arg0: i32) -> (i32, i32) {
    %c0_i32 = arith.constant 0 : i32
    %c0_i32_0 = arith.constant 0 : i32
    return %arg0, %c0_i32 : i32, i32
  }
}

</mosaic_0001>

<bundles_post_ra>
// kernel: ppo_actor_forward.1
= control target key start
LH: loop header
LB: loop body
LE: loop exit
PB: predicated region body
PF: predicated region fallthrough
CT: control target
= control target key end

     0   :  { %v443_v3 = vmov 0.0|0.0   ;;  %vm444_vm0 = vmmov 0   ;;  %v445_v6 = vmov 0.0   ;;  %s567_s0 = inlined_call_operand.vmem [shape: f32[8,32], index: 0, kind: input, shape index: {}]   ;;  %s568_s1 = inlined_call_operand.vmem [shape: s32[8,1], index: 1, kind: input, shape index: {}]   ;;  %s569_s2 = inlined_call_operand.vmem [shape: f32[32,32], index: 2, kind: input, shape index: {}]   ;;  %s570_s3 = inlined_call_operand.vmem [shape: f32[1,32], index: 3, kind: input, shape index: {}]   ;;  %s571_s4 = inlined_call_operand.vmem [shape: f32[32,32], index: 4, kind: input, shape index: {}]   ;;  %s572_s5 = inlined_call_operand.vmem [shape: f32[1,32], index: 5, kind: input, shape index: {}]   ;;  %s573_s6 = inlined_call_operand.vmem [shape: f32[32,128], index: 6, kind: input, shape index: {}]   ;;  %s574_s7 = inlined_call_operand.vmem [shape: f32[1,128], index: 7, kind: input, shape index: {}]   ;;  %s575_s8 = inlined_call_operand.hbm [shape: f32[8,8], index: 8, kind: output, shape index: {0}]   ;;  %s576_s9 = inlined_call_operand.vmem [shape: f32[8,1], index: 9, kind: output, shape index: {1}]  }
   0x1   :  { %v33_v0 = vld [vmem:[%s569_s2] sm:$0xff]  ;;  %v34_v1 = vld [vmem:[%s569_s2 + $0x8] sm:$0xff]  ;;  %v35_v2 = vld [vmem:[%s569_s2 + $0x10] sm:$0xff]  ;;  %387 = vmatprep.subr.bf16.mxu0 %v443_v3  ;;  %362 = vmatprep.mubr.msk.f32.mxu0 %vm444_vm0, %v445_v6 }
   0x2   :  { %v388_v4 = vpack.c.bf16 %v34_v1, %v33_v0  ;;  %v36_v5 = vld [vmem:[%s569_s2 + $0x18] sm:$0xff]  ;;  %393 = vmatprep.subr.bf16.mxu1 %v443_v3  ;;  %373 = vmatprep.mubr.msk.f32.mxu1 %vm444_vm0, %v445_v6 }
   0x3   :  { %15 = vsyncpa [#allocation3], 0  ;;  %v391_v7 = vpack.c.bf16 %v36_v5, %v35_v2  ;;  %v32_v8 = vld [vmem:[%s567_s0] sm:$0xff]  ;;  %vm44_vm1 = vcmask 261120   ;;  %v120_v10 = vld [vmem:[%s571_s4 + $0x8] sm:$0xff]  ;;  %v446_v31 = vmov 0   ;;  %v290_v32 = vlaneseq }
   0x4   :  { %389 = vmatpush3.bf16.msra.mxu0 %v388_v4  ;;  %v119_v9 = vld [vmem:[%s571_s4] sm:$0xff]  ;;  %v121_v11 = vld [vmem:[%s571_s4 + $0x10] sm:$0xff]  ;;  %v122_v13 = vld [vmem:[%s571_s4 + $0x18] sm:$0xff]  ;;  %410 = vset.pattern.permute.xlu0 %v446_v31  ;;  %vm288_vm3 = vcmask 64512  }
   0x5   :  { %390 = vmatprep.subr.bf16.mxu0 %v443_v3  ;;  %v394_v12 = vpack.c.bf16 %v120_v10, %v119_v9  ;;  %v397_v14 = vpack.c.bf16 %v122_v13, %v121_v11  ;;  %v333_v15 = vld [vmem:[%s570_s3] ss:$0 sm:$0xff]  ;;  %v205_v21 = vld [vmem:[%s573_s6 + $0x8] sm:$0xff]  ;;  %v206_v22 = vld [vmem:[%s573_s6 + $0x10] sm:$0xff]  ;;  %v291_v33 = vand.u32 127, %v290_v32 }
   0x6   :  { %v204_v20 = vld [vmem:[%s573_s6] sm:$0xff]  ;;  %v207_v24 = vld [vmem:[%s573_s6 + $0x18] sm:$0xff] }
   0x7   :  { %395 = vmatpush3.bf16.msra.mxu1 %v394_v12  ;;  %v400_v23 = vpack.c.bf16 %v205_v21, %v204_v20  ;;  %v403_v25 = vpack.c.bf16 %v207_v24, %v206_v22  ;;  %v335_v26 = vld [vmem:[%s572_s5] ss:$0 sm:$0xff]  ;;  %vm292_vm2 = vcmp.lt.s32.totalorder %v291_v33, 8 }
   0x8   :  { %392 = vmatpush3.bf16.msra.mxu0 %v391_v7  ;;  %396 = vmatprep.subr.bf16.mxu1 %v443_v3  ;;  %v337_v34 = vld [vmem:[%s574_s7] ss:$0 sm:$0xff]  ;;  %s447_s7 = smov [#allocation2]  }
   0x9   :  { %399 = vmatprep.subr.bf16.mxu0 %v443_v3  ;;  %v304_v39 = vld [vmem:[%s568_s1] sm:$0xff]  ;;  %s321_s16 = sshll.u32 %s447_s7, 4  ;;  %s322_s16 = int_to_ptr.vmem [resolvable:$true] %s321_s16 }
   0xa   :  { %s419_s17 = scalar_lea.vmem %s322_s16, 128  ;;  %p424_p1 = scmp.lt.s32.totalorder %s322_s16, %s322_s16 }
   0xb   :  { %363 = vmatmul.mubr.msk.f32.vlgmr.msra.gmra.mrb[0].mxu0 %vm44_vm1, %v32_v8  ;;  %398 = vmatpush3.bf16.msra.mxu1 %v397_v14  ;;  %p420_p0 = scmp.ne.s32.totalorder %s322_s16, %s419_s17  ;;  %p425_p2 = scmp.lt.s32.totalorder %s419_s17, %s419_s17 }
   0xc   :  { %384 = vmatprep.mubr.msk.f32.mxu0 %vm444_vm0, %v445_v6  ;;  %401 = vmatpush3.bf16.msra.mxu0 %v400_v23 }
   0xd   :  { %402 = vmatprep.subr.bf16.mxu0 %v443_v3  ;;  %p426_p3 = por %p425_p2, %p424_p1 }
   0xf   :  { %p427_p4 = pnand %p426_p3, %p420_p0 }
  0x10   :  { %404 = vmatpush3.bf16.msra.mxu0 %v403_v25 }
  0xde   :  { %v114_v16 = vpop.f32.mrb[0].mxu0 }
  0xdf   :  { %v115_v17 = vadd.f32 %v333_v15, %v114_v16  ;;  %v364_v18 = vpop.f32.mrb[1].mxu0 }
  0xe1   :  { %411 = vtanh.f32 %v115_v17 }
  0xeb   :  { %v412_v19 = vpop.eup %411 }
  0xec   :  { %374 = vmatmul.mubr.msk.f32.vlgmr.msra.gmra.mrb[0].mxu1 %vm44_vm1, %v412_v19 }
 0x1bf   :  { %v199_v27 = vpop.f32.mrb[0].mxu1 }
 0x1c0   :  { %v200_v28 = vadd.f32 %v335_v26, %v199_v27  ;;  %v375_v29 = vpop.f32.mrb[1].mxu1 }
 0x1c2   :  { %413 = vtanh.f32 %v200_v28 }
 0x1cc   :  { %v414_v30 = vpop.eup %413 }
 0x1cd   :  { %385 = vmatmul.mubr.msk.f32.vlgmr.msra.gmra.mrb[2].mxu0 %vm44_vm1, %v414_v30 }
 0x2a0   :  { %v284_v35 = vpop.f32.mrb[2].mxu0 }
 0x2a1   :  { %v285_v36 = vadd.f32 %v337_v34, %v284_v35  ;;  %v386_v37 = vpop.f32.mrb[3].mxu0 }
 0x2a3   :  { %v293_v38 = vsel %vm292_vm2, %v285_v36, -1e+30  ;;  %289 = vst.msk [vmem:[#allocation2] sm:$0xff] %vm288_vm3, %v285_v36 }
 0x2a4   :  { %294 = vmax.xlane.f32.xlu0 %v293_v38 }
 0x2ba   :  { %306 = vperm.xlu0 %410, %v304_v39  }
 0x331   :  { %v295_v40 = vpop.xlane.xlu0 %294 }
 0x332   :  { %v296_v41 = vsub.f32 %v293_v38, %v295_v40 }
 0x334   :  { %v297_v42 = vmul.f32 1.442695, %v296_v41 }
 0x336   :  { %415 = vpow2.f32 %v297_v42 }
 0x339   :  { %v307_v43 = vpop.permute.xlu0 %306 }
 0x33a   :  { %vm308_vm4 = vcmp.eq.s32.totalorder %v291_v33, %v307_v43 }
 0x33b   :  { %v309_v45 = vsel %vm308_vm4, %v285_v36, 0.0 }
 0x340   :  { %v416_v44 = vpop.eup %415 }
 0x341   :  { %299 = vadd.xlane.f32.xlu1 %v416_v44 }
 0x345   :  { %310 = vadd.xlane.f32.xlu1 %v309_v45 }
 0x346   :  { %430 = shalt.err (!%p427_p4)
}
 0x347   :  { %s431_s2 = scalar_lea.hbm %s575_s8, 128 }
 0x348   :  { %p432_p5 = scmp.ne.s32.totalorder %s575_s8, %s431_s2  ;;  %p435_p6 = scmp.lt.u32.totalorder %s431_s2, %s575_s8 }
 0x34a   :  { %p437_p7 = pnand %p435_p6, %p432_p5 }
 0x34c   :  { %440 = shalt.err (!%p437_p7)
}
 0x34d   :  { %324 = dma.vmem_to_hbm [thread:$0]  %s322_s16, 128, %s575_s8, [#allocation3]   ;;  %vm313_vm5 = vcmask 7168  }
 0x3ce   :  { %v300_v46 = vpop.xlane.xlu1 %299 }
 0x3cf   :  { %417 = vlog2.f32 %v300_v46 }
 0x3d2   :  { %v311_v50 = vpop.xlane.xlu1 %310 }
 0x3d9   :  { %v418_v47 = vpop.eup %417 }
 0x3da   :  { %v302_v48 = vmul.f32 0.6931472, %v418_v47 }
 0x3dc   :  { %v303_v49 = vadd.f32 %v302_v48, %v295_v40 }
 0x3de   :  { %v312_v51 = vsub.f32 %v311_v50, %v303_v49 }
 0x3e0   :  { %314 = vst.msk [vmem:[%s576_s9] sm:$0xff] %vm313_vm5, %v312_v51 }
 0x3e1   :  { %441 = dma.done.wait [#allocation3], 128  }
 0x3e2   :  { %442 = vsyncadd [#allocation3], 4294967168 }
 0x3e3   :  { %332 = vsyncpa [#allocation3], 1 }

</bundles_post_ra>
